<compile_context>
chip_gen: v7x
topology: tpu7x:2x2x1
jax: 0.10.0
libtpu: 0.0.40
codegen_flags: <defaults>
</compile_context>

<pallas_src>
import jax
import jax.numpy as jnp
import numpy as np
from jax.experimental import pallas as pl
from jax.experimental.pallas import tpu as pltpu

NUM_STATE = 4        # CartPole observation dim
NUM_ACTION = 2       # CartPole action dim
HIDDEN = 100
HIDDEN_PAD = 128     # lane-aligned hidden width (col 100 = constant-1 unit)
K_IN = NUM_STATE + 1 # +1 ones column that carries the fc1 bias into the matmul


def _round_up(n, m):
    return ((n + m - 1) // m) * m


def prepare_actor_params(w1, b1, w2, b2):
    """One-time parameter prep (hoisted out of the per-call forward).

    w1: (4, 100)  b1: (100,)  w2: (100, 2)  b2: (2,)   (x @ W + b convention)
    Returns:
      w1p: (5, 128)  rows 0..3 = w1, row 4 = b1 (fed by the ones column);
                     column 100 gets a 1.0 in row 4 -> constant-1 hidden unit.
      wd2: (128, 2)  +/- logit-difference head; row 100 carries the head bias.
    """
    w1 = jnp.asarray(w1, jnp.float32).reshape(NUM_STATE, HIDDEN)
    b1 = jnp.asarray(b1, jnp.float32).reshape(HIDDEN)
    w2 = jnp.asarray(w2, jnp.float32).reshape(HIDDEN, NUM_ACTION)
    b2 = jnp.asarray(b2, jnp.float32).reshape(NUM_ACTION)

    w1p = jnp.zeros((K_IN, HIDDEN_PAD), jnp.float32)
    w1p = w1p.at[:NUM_STATE, :HIDDEN].set(w1)
    w1p = w1p.at[NUM_STATE, :HIDDEN].set(b1)   # fc1 bias row
    w1p = w1p.at[NUM_STATE, HIDDEN].set(1.0)   # constant-1 hidden unit (col 100)

    d = w2[:, 1] - w2[:, 0]                    # logit-difference weights
    bd = b2[1] - b2[0]
    wd2 = jnp.zeros((HIDDEN_PAD, NUM_ACTION), jnp.float32)
    wd2 = wd2.at[:HIDDEN, 0].set(-d)
    wd2 = wd2.at[:HIDDEN, 1].set(d)
    wd2 = wd2.at[HIDDEN, 0].set(-bd)           # head bias via constant-1 unit
    wd2 = wd2.at[HIDDEN, 1].set(bd)
    return w1p, wd2


def actor_kernel(x_ref, w1_ref, wd_ref, out_ref):
    # fc1 (+bias via the ones column of x), ReLU.  MXU matmul, f32 accumulation.
    h = jnp.dot(x_ref[...], w1_ref[...], preferred_element_type=jnp.float32)
    h = jnp.maximum(h, 0.0)                                   # (tb, 128)

    # Action head folded into +/- logit difference on the MXU:
    #   dd[:, 1] = l1 - l0 = d,   dd[:, 0] = -d   (head bias included).
    dd = jnp.dot(h, wd_ref[...], preferred_element_type=jnp.float32)  # (tb, 2)

    # softmax over 2 logits == sigmoid(+/-d) == 0.5 * (1 + tanh(+/-d / 2)).
    out_ref[...] = (0.5 * (1.0 + jnp.tanh(0.5 * dd))).astype(out_ref.dtype)


def actor_forward(x, prepared_params, *, block_b=2048):
    """x: (B, 4) f32; prepared_params from prepare_actor_params()."""
    w1p, wd2 = prepared_params
    x = jnp.asarray(x, jnp.float32)
    B = x.shape[0]

    # Fold the fc1 bias into the matmul: append a constant-1 column (K=4 -> 5).
    x5 = jnp.concatenate([x, jnp.ones((B, 1), jnp.float32)], axis=1)

    # Batch tile: large to amortize ~0.35us/step overhead, but split into >=2
    # steps when possible so v7x's two TensorCores both get work.
    # VMEM @ tb=2048: x+out+h lane-padded blocks ~ 7 MiB << 32 MiB default.
    tb = int(min(block_b, max(8, _round_up(pl.cdiv(B, 2), 8))))
    grid = (pl.cdiv(B, tb),)   # partial tail block: OOB reads discarded, writes masked

    return pl.pallas_call(
        actor_kernel,
        out_shape=jax.ShapeDtypeStruct((B, NUM_ACTION), jnp.float32),
        grid=grid,
        in_specs=[
            pl.BlockSpec((tb, K_IN), lambda i: (i, 0)),                # x tile
            pl.BlockSpec((K_IN, HIDDEN_PAD), lambda i: (0, 0)),        # w1p (resident)
            pl.BlockSpec((HIDDEN_PAD, NUM_ACTION), lambda i: (0, 0)),  # wd2 (resident)
        ],
        out_specs=pl.BlockSpec((tb, NUM_ACTION), lambda i: (i, 0)),
        compiler_params=pltpu.CompilerParams(
            dimension_semantics=("parallel",),
        ),
    )(x5, w1p, wd2)


def init_params(key):
    """Deterministic synthetic init (PyTorch-default-like uniform ranges)."""
    k1, k2, k3, k4 = jax.random.split(key, 4)
    lim1 = 1.0 / np.sqrt(NUM_STATE)
    lim2 = 1.0 / np.sqrt(HIDDEN)
    # stored as (in, out) so the forward computes x @ W + b
    w1 = jax.random.uniform(k1, (NUM_STATE, HIDDEN), jnp.float32, -lim1, lim1)
    b1 = jax.random.uniform(k2, (HIDDEN,), jnp.float32, -lim1, lim1)
    w2 = jax.random.uniform(k3, (HIDDEN, NUM_ACTION), jnp.float32, -lim2, lim2)
    b2 = jax.random.uniform(k4, (NUM_ACTION,), jnp.float32, -lim2, lim2)
    return w1, b1, w2, b2


def reference_forward(x, w1, b1, w2, b2):
    hp = jax.lax.Precision.HIGHEST
    h = jnp.maximum(jnp.dot(x, w1, precision=hp) + b1, 0.0)
    logits = jnp.dot(h, w2, precision=hp) + b2
    return jax.nn.softmax(logits, axis=1)


if __name__ == "__main__":
    key = jax.random.PRNGKey(0)
    kx, kx2, kp = jax.random.split(key, 3)
    w1, b1, w2, b2 = init_params(kp)
    params = prepare_actor_params(w1, b1, w2, b2)   # one-time prep (hoisted)

    # Small batch (single grid step).
    B = 8
    x = jax.random.normal(kx, (B, NUM_STATE), dtype=jnp.float32)
    out = jax.block_until_ready(actor_forward(x, params))
    ref = reference_forward(x, w1, b1, w2, b2)
    np.testing.assert_allclose(np.asarray(out), np.asarray(ref), rtol=1e-4, atol=2e-5)
    np.testing.assert_allclose(np.asarray(out).sum(axis=1), np.ones(B), rtol=1e-5, atol=1e-5)

    # Multi-tile path (grid > 1, partial tail block exercised: 200 = 3*64 + 8).
    B2 = 200
    x2 = jax.random.normal(kx2, (B2, NUM_STATE), dtype=jnp.float32)
    out2 = jax.block_until_ready(actor_forward(x2, params, block_b=64))
    ref2 = reference_forward(x2, w1, b1, w2, b2)
    np.testing.assert_allclose(np.asarray(out2), np.asarray(ref2), rtol=1e-4, atol=2e-5)
    np.testing.assert_allclose(np.asarray(out2).sum(axis=1), np.ones(B2), rtol=1e-5, atol=1e-5)

    print("KERNEL_OK")
</pallas_src>

<mosaic_0001>
module attributes {stable_mosaic.version = 11 : i64} {
  func.func @actor_kernel(%arg0: i32, %arg1: memref<8x5xf32, #tpu.memory_space<vmem>>, %arg2: memref<5x128xf32, #tpu.memory_space<vmem>>, %arg3: memref<128x2xf32, #tpu.memory_space<vmem>>, %arg4: memref<8x2xf32, #tpu.memory_space<vmem>>) attributes {dimension_semantics = [#tpu.dimension_semantics<parallel>], iteration_bounds = array<i64: 1>, scalar_prefetch = 0 : i64, scratch_operands = 0 : i64, tpu.core_type = #tpu.core_type<tc>, window_params = [{transform_indices = @transform_0, window_bounds = array<i64: 8, 5>}, {pipeline_mode = #tpu.pipeline_mode<synchronous>, transform_indices = @transform_1, window_bounds = array<i64: 5, 128>}, {pipeline_mode = #tpu.pipeline_mode<synchronous>, transform_indices = @transform_2, window_bounds = array<i64: 128, 2>}, {transform_indices = @transform_3, window_bounds = array<i64: 8, 2>}]} {
    %c0 = arith.constant 0 : index
    %c0_0 = arith.constant 0 : index
    %0 = vector.load %arg1[%c0, %c0_0] : memref<8x5xf32, #tpu.memory_space<vmem>>, vector<8x5xf32>
    %c0_1 = arith.constant 0 : index
    %c0_2 = arith.constant 0 : index
    %1 = vector.load %arg2[%c0_1, %c0_2] : memref<5x128xf32, #tpu.memory_space<vmem>>, vector<5x128xf32>
    %cst = arith.constant dense<0.000000e+00> : vector<8x128xf32>
    %2 = tpu.matmul %0, %1, %cst {dimension_numbers = #tpu.dot_dimension_numbers<[1], [0], [0], [1], [0, 0, 1, 1], [], []>} : vector<8x5xf32>, vector<5x128xf32>, vector<8x128xf32> -> vector<8x128xf32>
    %cst_3 = arith.constant 0.000000e+00 : f32
    %3 = vector.broadcast %cst_3 : f32 to vector<8x128xf32>
    %4 = arith.maximumf %2, %3 : vector<8x128xf32>
    %c0_4 = arith.constant 0 : index
    %c0_5 = arith.constant 0 : index
    %5 = vector.load %arg3[%c0_4, %c0_5] : memref<128x2xf32, #tpu.memory_space<vmem>>, vector<128x2xf32>
    %cst_6 = arith.constant dense<0.000000e+00> : vector<8x2xf32>
    %6 = tpu.matmul %4, %5, %cst_6 {dimension_numbers = #tpu.dot_dimension_numbers<[1], [0], [0], [1], [0, 0, 1, 1], [], []>} : vector<8x128xf32>, vector<128x2xf32>, vector<8x2xf32> -> vector<8x2xf32>
    %cst_7 = arith.constant 5.000000e-01 : f32
    %7 = vector.broadcast %cst_7 : f32 to vector<8x2xf32>
    %8 = arith.mulf %7, %6 : vector<8x2xf32>
    %9 = math.tanh %8 : vector<8x2xf32>
    %cst_8 = arith.constant 1.000000e+00 : f32
    %10 = vector.broadcast %cst_8 : f32 to vector<8x2xf32>
    %11 = arith.addf %10, %9 : vector<8x2xf32>
    %cst_9 = arith.constant 5.000000e-01 : f32
    %12 = vector.broadcast %cst_9 : f32 to vector<8x2xf32>
    %13 = arith.mulf %12, %11 : vector<8x2xf32>
    %c0_10 = arith.constant 0 : index
    %c0_11 = arith.constant 0 : index
    %14 = vector.load %arg4[%c0_10, %c0_11] : memref<8x2xf32, #tpu.memory_space<vmem>>, vector<8x2xf32>
    tpu.vector_store %arg4[%c0_10, %c0_11], %13 {strides = array<i32>} : memref<8x2xf32, #tpu.memory_space<vmem>>, vector<8x2xf32>,
    return
  }
  func.func @transform_0(%arg0: i32) -> (i32, i32) {
    %c0_i32 = arith.constant 0 : i32
    %c0_i32_0 = arith.constant 0 : i32
    return %arg0, %c0_i32 : i32, i32
  }
  func.func @transform_1(%arg0: i32) -> (i32, i32) {
    %c0_i32 = arith.constant 0 : i32
    %c0_i32_0 = arith.constant 0 : i32
    %c0_i32_1 = arith.constant 0 : i32
    return %c0_i32, %c0_i32_0 : i32, i32
  }
  func.func @transform_2(%arg0: i32) -> (i32, i32) {
    %c0_i32 = arith.constant 0 : i32
    %c0_i32_0 = arith.constant 0 : i32
    %c0_i32_1 = arith.constant 0 : i32
    return %c0_i32, %c0_i32_0 : i32, i32
  }
  func.func @transform_3(%arg0: i32) -> (i32, i32) {
    %c0_i32 = arith.constant 0 : i32
    %c0_i32_0 = arith.constant 0 : i32
    return %arg0, %c0_i32 : i32, i32
  }
}

</mosaic_0001>

<bundles_post_ra>
// kernel: tpu_custom_call.1
= control target key start
LH: loop header
LB: loop body
LE: loop exit
PB: predicated region body
PF: predicated region fallthrough
CT: control target
= control target key end

     0   :  { %vm20_vm0 = vcmask 1044480   ;;  %vm16_vm1 = vcmask 39936   ;;  %v281_v0 = vmov 0.0   ;;  %vm282_vm2 = vmmov 0   ;;  %s361_s1 = inlined_call_operand.vmem [shape: f32[5,128], index: 1, kind: input, shape index: {}]   ;;  %s362_s0 = inlined_call_operand.vmem [shape: f32[8,5], index: 0, kind: input, shape index: {}]   ;;  %s363_s2 = inlined_call_operand.vmem [shape: f32[128,2], index: 2, kind: input, shape index: {}]   ;;  %s364_s3 = inlined_call_operand.vmem [shape: f32[8,2], index: 3, kind: output, shape index: {}]  }
   0x1   :  { %212 = vmatprep.subr.mxu0 %v281_v0  ;;  %v15_v1 = vld [vmem:[%s361_s1] sm:$0x1f]  ;;  %214 = vmatprep.mubr.msk.f32.mxu0 %vm282_vm2, %v281_v0  ;;  %v283_v4 = vmov 0.0|0.0   ;;  %v96_v5 = vld [vmem:[%s363_s2 + $0x8] sm:$0xff]  ;;  %v97_v6 = vld [vmem:[%s363_s2 + $0x10] sm:$0xff]  ;;  %vm185_vm3 = vcmask 15360  }
   0x2   :  { %v14_v2 = vld [vmem:[%s362_s0] sm:$0xff]  ;;  %213 = vmatpush3.msk.msra.mxu0 %vm20_vm0, %v15_v1  ;;  %252 = vmatprep.subr.bf16.mxu1 %v283_v4  ;;  %v98_v7 = vld [vmem:[%s363_s2 + $0x18] sm:$0xff]  ;;  %v100_v11 = vld [vmem:[%s363_s2 + $0x28] sm:$0xff] }
   0x3   :  { %v95_v3 = vld [vmem:[%s363_s2] sm:$0xff]  ;;  %215 = vmatmul.mubr.msk.f32.vlgmr.msra.gmra.mrb[0].mxu0 %vm16_vm1, %v14_v2  ;;  %249 = vmatprep.mubr.msk.f32.mxu1 %vm282_vm2, %v281_v0  ;;  %v256_v9 = vpack.c.bf16 %v98_v7, %v97_v6  ;;  %v101_v13 = vld [vmem:[%s363_s2 + $0x30] sm:$0xff]  ;;  %v102_v14 = vld [vmem:[%s363_s2 + $0x38] sm:$0xff] }
   0x4   :  { %v253_v8 = vpack.c.bf16 %v96_v5, %v95_v3  ;;  %v99_v10 = vld [vmem:[%s363_s2 + $0x20] sm:$0xff]  ;;  %v262_v15 = vpack.c.bf16 %v102_v14, %v101_v13  ;;  %v104_v17 = vld [vmem:[%s363_s2 + $0x48] sm:$0xff]  ;;  %v105_v19 = vld [vmem:[%s363_s2 + $0x50] sm:$0xff] }
   0x5   :  { %v259_v12 = vpack.c.bf16 %v100_v11, %v99_v10  ;;  %v103_v16 = vld [vmem:[%s363_s2 + $0x40] sm:$0xff]  ;;  %v106_v20 = vld [vmem:[%s363_s2 + $0x58] sm:$0xff]  ;;  %v108_v23 = vld [vmem:[%s363_s2 + $0x68] sm:$0xff] }
   0x6   :  { %254 = vmatpush3.bf16.msra.mxu1 %v253_v8  ;;  %v265_v18 = vpack.c.bf16 %v104_v17, %v103_v16  ;;  %v268_v21 = vpack.c.bf16 %v106_v20, %v105_v19  ;;  %v107_v22 = vld [vmem:[%s363_s2 + $0x60] sm:$0xff]  ;;  %v109_v25 = vld [vmem:[%s363_s2 + $0x70] sm:$0xff]  ;;  %v110_v26 = vld [vmem:[%s363_s2 + $0x78] sm:$0xff] }
   0x7   :  { %255 = vmatprep.subr.bf16.mxu1 %v283_v4  ;;  %v271_v24 = vpack.c.bf16 %v108_v23, %v107_v22  ;;  %v274_v27 = vpack.c.bf16 %v110_v26, %v109_v25 }
   0xa   :  { %257 = vmatpush3.bf16.msra.mxu1 %v256_v9 }
   0xb   :  { %258 = vmatprep.subr.bf16.mxu1 %v283_v4 }
   0xe   :  { %260 = vmatpush3.bf16.msra.mxu1 %v259_v12 }
   0xf   :  { %261 = vmatprep.subr.bf16.mxu1 %v283_v4 }
  0x12   :  { %263 = vmatpush3.bf16.msra.mxu1 %v262_v15 }
  0x13   :  { %264 = vmatprep.subr.bf16.mxu1 %v283_v4 }
  0x16   :  { %266 = vmatpush3.bf16.msra.mxu1 %v265_v18 }
  0x17   :  { %267 = vmatprep.subr.bf16.mxu1 %v283_v4 }
  0x1a   :  { %269 = vmatpush3.bf16.msra.mxu1 %v268_v21 }
  0x1b   :  { %270 = vmatprep.subr.bf16.mxu1 %v283_v4 }
  0x1e   :  { %272 = vmatpush3.bf16.msra.mxu1 %v271_v24 }
  0x1f   :  { %273 = vmatprep.subr.bf16.mxu1 %v283_v4 }
  0x22   :  { %275 = vmatpush3.bf16.msra.mxu1 %v274_v27 }
  0xd6   :  { %v90_v28 = vpop.f32.mrb[0].mxu0 }
  0xd7   :  { %v94_v29 = vmax.f32 %v90_v28, 0.0  ;;  %v216_v30 = vpop.f32.mrb[1].mxu0 }
  0xd9   :  { %250 = vmatmul.mubr.f32.vlgmr.msra.gmra.mrb[0].mxu1 %v94_v29 }
 0x1ac   :  { %v177_v31 = vpop.f32.mrb[0].mxu1 }
 0x1ad   :  { %v181_v32 = vmul.f32 0.5, %v177_v31  ;;  %v251_v33 = vpop.f32.mrb[1].mxu1 }
 0x1af   :  { %279 = vtanh.f32 %v181_v32 }
 0x1b9   :  { %v280_v34 = vpop.eup %279 }
 0x1ba   :  { %v183_v35 = vadd.f32 1.0, %v280_v34 }
 0x1bc   :  { %v184_v36 = vmul.f32 0.5, %v183_v35 }
 0x1be   :  { %186 = vst.msk [vmem:[%s364_s3] sm:$0xff] %vm185_vm3, %v184_v36 }

</bundles_post_ra>
